<compile_context>
chip_gen: v7x
topology: tpu7x:2x2x1
jax: 0.10.0
libtpu: 0.0.40
codegen_flags: <defaults>
</compile_context>

<pallas_src>
import functools
import math

import jax
import jax.numpy as jnp
from jax.experimental import pallas as pl
from jax.experimental.pallas import tpu as pltpu


def make_pe_2d(d_model: int, max_len: int, pe_temp: float,
               dtype=jnp.float32) -> jax.Array:
    """Builds the (max_len, max_len, d_model) buffer exactly like __init__."""
    position = jnp.arange(max_len, dtype=jnp.float32)[:, None]        # (L, 1)
    dim_t = jnp.arange(0, d_model, 2, dtype=jnp.float32)              # (D/2,)
    scaling = pe_temp ** (dim_t / d_model)                            # (D/2,)
    pe = jnp.zeros((max_len, d_model), jnp.float32)
    pe = pe.at[:, 0::2].set(jnp.sin(position / scaling))
    pe = pe.at[:, 1::2].set(jnp.cos(position / scaling))
    # pe_2D[a, b, i] = pe[a, i] + pe[b, i]
    pe_2d = pe[:, None, :] + pe[None, :, :]                           # (L, L, D)
    return pe_2d.astype(dtype)


def _pe_add_kernel(x_ref, pe_ref, o_ref):
    # (tb, th, tw*D) + (th, tw*D) broadcast add; single lane-dense VPU add/store.
    o_ref[...] = x_ref[...] + pe_ref[...]


def _pe_add_dropout_kernel(seed_ref, x_ref, pe_ref, o_ref, *, keep_prob):
    # Training-mode dropout with the on-chip PRNG (unique seed per block).
    h = pl.program_id(0)
    w = pl.program_id(1)
    b = pl.program_id(2)
    pid = (h * pl.num_programs(1) + w) * pl.num_programs(2) + b
    pltpu.prng_seed(seed_ref[0] + pid)
    y = x_ref[...] + pe_ref[...]
    bits = pltpu.bitcast(pltpu.prng_random_bits(y.shape), jnp.int32)
    r31 = bits & jnp.int32(0x7FFFFFFF)               # uniform int in [0, 2^31)
    # Note: keep_prob is quantized to 2^-31 and the clamp below means a
    # dropout rate of ~1.0 cannot drop every element -- negligible in practice.
    drop_thresh = jnp.int32(min(int((1.0 - keep_prob) * 2.0 ** 31), 2 ** 31 - 1))
    keep = r31 >= drop_thresh
    scaled = y * jnp.asarray(1.0 / keep_prob, y.dtype)
    o_ref[...] = jnp.where(keep, scaled, jnp.zeros_like(scaled))


def _choose_tiles(b: int, h: int, w: int, d: int, itemsize: int,
                  budget_bytes: int) -> tuple[int, int, int]:
    """Pick (tb, th, tw) so one x/out block stays within `budget_bytes`.

    Lane axis: split W only if a single flattened row (W*D) exceeds the
    budget, keeping d_model contiguous and tw*D a multiple of 128 lanes.
    Sublane axis: multiple of 8 rows (or full H).  Batch is folded into the
    block as far as the budget allows.
    """
    if w * d * itemsize <= budget_bytes:
        tw = w
    else:
        step = 128 // math.gcd(d, 128)          # smallest W step with tw*D % 128 == 0
        tw = max(step, (budget_bytes // (d * itemsize)) // step * step)
        tw = min(tw, w)
    row_bytes = tw * d * itemsize

    if h * row_bytes <= budget_bytes:
        th = h
    else:
        th = max(8, (budget_bytes // max(row_bytes, 1)) // 8 * 8)
        th = min(th, h)
    tile_bytes = th * row_bytes

    tb = max(1, min(b, budget_bytes // max(tile_bytes, 1)))
    return tb, th, tw


def pos_encode_2d(x: jax.Array, pe_flat: jax.Array, dropout_percent: float = 0.0,
                  *, training: bool = False, seed: int = 0) -> jax.Array:
    """Pallas forward of PosEncode2D: dropout(x + pe_2d[None, :H, :W, :]).

    `pe_flat` must be the pre-sliced, pre-flattened, dtype-matched buffer of
    shape (H, W*D) (the module below caches it so the slice/reshape/cast is
    not paid on every forward call).
    """
    assert x.ndim == 4, "expected (batch, height, width, d_model)"
    b_, h_, w_, d_ = x.shape
    wd = w_ * d_
    assert pe_flat.shape == (h_, wd), (pe_flat.shape, (h_, wd))
    assert pe_flat.dtype == x.dtype

    x2 = x.reshape(b_, h_, wd)                                 # lane-dense view
    itemsize = x.dtype.itemsize
    use_dropout = training and dropout_percent > 0.0

    # ~4 MiB blocks -> ~24 MiB live with double-buffered x/out/pe, safe under
    # v7x's 64 MiB physical VMEM (and trivially under 128 MiB on v5e/v6e).
    # The dropout path materializes a block-sized int32 PRNG temp, so shave
    # the budget there.
    block_budget = (3 << 20) if use_dropout else (4 << 20)
    tb, th, tw = _choose_tiles(b_, h_, w_, d_, itemsize, block_budget)
    num_h, num_w, num_b = pl.cdiv(h_, th), pl.cdiv(w_, tw), pl.cdiv(b_, tb)

    # v7x has 2 TensorCores: make sure at least one parallel axis has >=2
    # programs so both get work (pure overhead-free on 1-TC v5e/v6e).
    if num_h * num_w * num_b == 1:
        if b_ >= 2:
            tb = (b_ + 1) // 2
            num_b = pl.cdiv(b_, tb)
        elif h_ > 8:
            th = max(8, ((h_ // 2) // 8) * 8)
            num_h = pl.cdiv(h_, th)

    twd = tw * d_
    grid = (num_h, num_w, num_b)       # batch innermost -> pe tile reused

    x_spec = pl.BlockSpec((tb, th, twd), lambda h, w, b: (b, h, w))
    pe_spec = pl.BlockSpec((th, twd), lambda h, w, b: (h, w))
    out_spec = pl.BlockSpec((tb, th, twd), lambda h, w, b: (b, h, w))
    out_shape = jax.ShapeDtypeStruct((b_, h_, wd), x.dtype)

    cost = pl.CostEstimate(
        flops=b_ * h_ * wd,
        transcendentals=0,
        bytes_accessed=(2 * b_ * h_ * wd + h_ * wd) * itemsize,
    )
    cparams = pltpu.CompilerParams(
        dimension_semantics=("parallel", "parallel", "parallel"),
        vmem_limit_bytes=40 << 20,     # sized for v7x's 64 MiB per-TC VMEM
    )

    if not use_dropout:
        out = pl.pallas_call(
            _pe_add_kernel,
            out_shape=out_shape,
            grid=grid,
            in_specs=[x_spec, pe_spec],
            out_specs=out_spec,
            compiler_params=cparams,
            cost_estimate=cost,
        )(x2, pe_flat)
    else:
        keep_prob = 1.0 - float(dropout_percent)
        kernel = functools.partial(_pe_add_dropout_kernel, keep_prob=keep_prob)
        seed_arr = jnp.asarray([seed], dtype=jnp.int32)
        out = pl.pallas_call(
            kernel,
            out_shape=out_shape,
            grid=grid,
            in_specs=[pl.BlockSpec(memory_space=pltpu.MemorySpace.SMEM),
                      x_spec, pe_spec],
            out_specs=out_spec,
            compiler_params=cparams,
            cost_estimate=cost,
        )(seed_arr, x2, pe_flat)

    return out.reshape(b_, h_, w_, d_)


class PosEncode2D:
    """JAX/Pallas mirror of the PyTorch module (buffer built at construction)."""

    def __init__(self, d_model, dropout_percent, max_len, PE_temp):
        assert d_model % 2 == 0, "d_model must be even (same as PyTorch module)"
        self.d_model = d_model
        self.dropout_percent = float(dropout_percent)
        self.pe = make_pe_2d(d_model, max_len, float(PE_temp))   # (L, L, D)
        self._pe_flat_cache = {}   # (h, w, dtype) -> (h, w*d) dtype-cast buffer

    def _pe_flat(self, h, w, dtype):
        # Hoisted out of the per-call path: the non-contiguous slice+reshape
        # (+ dtype cast, e.g. bf16) is materialized once per (h, w, dtype).
        key = (h, w, jnp.dtype(dtype).name)
        pe = self._pe_flat_cache.get(key)
        if pe is None:
            d = self.pe.shape[-1]
            pe = jnp.asarray(self.pe[:h, :w, :].reshape(h, w * d), dtype=dtype)
            self._pe_flat_cache[key] = pe
        return pe

    def __call__(self, x, *, training=False, seed=0):
        _, h, w, _ = x.shape
        pe_flat = self._pe_flat(h, w, x.dtype)
        return pos_encode_2d(x, pe_flat, self.dropout_percent,
                             training=training, seed=seed)


if __name__ == "__main__":
    key = jax.random.PRNGKey(0)
    batch, height, width, d_model = 2, 16, 16, 32
    max_len, pe_temp, dropout_percent = 16, 10000.0, 0.1

    x = jax.random.normal(key, (batch, height, width, d_model), dtype=jnp.float32)

    module = PosEncode2D(d_model, dropout_percent, max_len, pe_temp)
    out = jax.block_until_ready(module(x))   # eval-mode forward: dropout = identity

    ref = x + module.pe[None, :height, :width, :]
    assert out.shape == ref.shape, (out.shape, ref.shape)
    assert out.dtype == ref.dtype
    assert jnp.allclose(out, ref, atol=1e-6, rtol=1e-6), "PosEncode2D mismatch"

    # Non-square, non-multiple-of-8 spatial shape: exercises full-dim blocks,
    # partial-grid handling and the per-(H, W, dtype) pe cache.
    x_odd = jax.random.normal(jax.random.PRNGKey(1), (2, 12, 10, d_model),
                              dtype=jnp.float32)
    out_odd = jax.block_until_ready(module(x_odd))
    ref_odd = x_odd + module.pe[None, :12, :10, :]
    assert jnp.allclose(out_odd, ref_odd, atol=1e-6, rtol=1e-6), "odd-shape mismatch"

    print("KERNEL_OK")
</pallas_src>

<mosaic_0001>
module attributes {stable_mosaic.version = 11 : i64} {
  func.func @_pe_add_kernel(%arg0: i32, %arg1: i32, %arg2: i32, %arg3: memref<1x16x512xf32, #tpu.memory_space<vmem>>, %arg4: memref<16x512xf32, #tpu.memory_space<vmem>>, %arg5: memref<1x16x512xf32, #tpu.memory_space<vmem>>) attributes {dimension_semantics = [#tpu.dimension_semantics<parallel>, #tpu.dimension_semantics<parallel>, #tpu.dimension_semantics<parallel>], iteration_bounds = array<i64: 1, 1, 2>, scalar_prefetch = 0 : i64, scratch_operands = 0 : i64, tpu.core_type = #tpu.core_type<tc>, window_params = [{transform_indices = @transform_0, window_bounds = array<i64: 1, 16, 512>}, {transform_indices = @transform_1, window_bounds = array<i64: 16, 512>}, {transform_indices = @transform_2, window_bounds = array<i64: 1, 16, 512>}]} {
    %c0 = arith.constant 0 : index
    %c0_0 = arith.constant 0 : index
    %c0_1 = arith.constant 0 : index
    %0 = vector.load %arg3[%c0, %c0_0, %c0_1] : memref<1x16x512xf32, #tpu.memory_space<vmem>>, vector<1x16x512xf32>
    %c0_2 = arith.constant 0 : index
    %c0_3 = arith.constant 0 : index
    %1 = vector.load %arg4[%c0_2, %c0_3] : memref<16x512xf32, #tpu.memory_space<vmem>>, vector<16x512xf32>
    %2 = vector.shape_cast %1 : vector<16x512xf32> to vector<1x16x512xf32>
    %3 = arith.addf %0, %2 : vector<1x16x512xf32>
    %c0_4 = arith.constant 0 : index
    %c0_5 = arith.constant 0 : index
    %c0_6 = arith.constant 0 : index
    %4 = vector.load %arg5[%c0_4, %c0_5, %c0_6] : memref<1x16x512xf32, #tpu.memory_space<vmem>>, vector<1x16x512xf32>
    tpu.vector_store %arg5[%c0_4, %c0_5, %c0_6], %3 {strides = array<i32>} : memref<1x16x512xf32, #tpu.memory_space<vmem>>, vector<1x16x512xf32>,
    return
  }
  func.func @transform_0(%arg0: i32, %arg1: i32, %arg2: i32) -> (i32, i32, i32) {
    %c0_i32 = arith.constant 0 : i32
    return %arg2, %arg0, %arg1 : i32, i32, i32
  }
  func.func @transform_1(%arg0: i32, %arg1: i32, %arg2: i32) -> (i32, i32) {
    %c0_i32 = arith.constant 0 : i32
    return %arg0, %arg1 : i32, i32
  }
  func.func @transform_2(%arg0: i32, %arg1: i32, %arg2: i32) -> (i32, i32, i32) {
    %c0_i32 = arith.constant 0 : i32
    return %arg2, %arg0, %arg1 : i32, i32, i32
  }
}

</mosaic_0001>

<bundles_post_ra>
// kernel: tpu_custom_call.1
= control target key start
LH: loop header
LB: loop body
LE: loop exit
PB: predicated region body
PF: predicated region fallthrough
CT: control target
= control target key end

     0   :  { %7 = vsyncpa [#allocation3], 0  ;;  %s887_s0 = inlined_call_operand.hbm [shape: f32[2,16,512], index: 0, kind: input, shape index: {}]   ;;  %s888_s1 = inlined_call_operand.hbm [shape: f32[16,512], index: 1, kind: input, shape index: {}]   ;;  %s889_s2 = inlined_call_operand.hbm [shape: f32[2,16,512], index: 2, kind: output, shape index: {}]  }
   0x1   :  { %9 = vsyncpa [#allocation3 + $0x1], 0 }
   0x2   :  { %10 = vsyncpa [#allocation6], 0 }
   0x3   :  { %11 = vsyncpa [#allocation4], 0 }
   0x4   :  { %13 = vsyncpa [#allocation4 + $0x1], 0  ;;  %s652_s9 = smov 0   ;;  %s654_s10 = smov 0  }
   0x5   :  { %s656_s11 = smov 0   ;;  %s658_s12 = smov 0  }
   0x6   :  { %s660_s13 = smov 0   ;;  %s662_s14 = smov 0  }
   0x7 LB: > { %s388_s15 = sadd.s32 4294967295, %s628_s14   ;;  %s389_s16 = sadd.s32 4294967294, %s628_s14   ;;  %s628_s14 = sphi %s662_s14, %s19_s14   ;;  %s624_s13 = sphi %s660_s13, %s913_s13   ;;  %s620_s12 = sphi %s658_s12, %s912_s12   ;;  %s616_s11 = sphi %s656_s11, %s911_s11   ;;  %s612_s10 = sphi %s654_s10, %s910_s10   ;;  %s608_s9 = sphi %s652_s9, %s909_s9  }
   0x8   : > { %p62_p0 = scmp.ne.s32.totalorder %s612_s10, %s608_s9  ;;  %p686_p1 = scmp.eq.s32.totalorder %s388_s15, 0 }
   0x9   : > { %p690_p2 = scmp.eq.s32.totalorder %s388_s15, 1  ;;  %p124_p3 = scmp.eq.s32.totalorder %s389_s16, 1 }
   0xa   : > { %s894_s17 = scalar_select %p686_p1, 1, 0 }
   0xb   : > { %s895_s18 = scalar_select %p690_p2, 1, 0 }
   0xc   : > { %p696_p4 = por %p686_p1, %p62_p0  ;;  %p390_p5 = scmp.ge.s32.totalorder %s628_s14, 1 }
   0xd   : > { %p701_p6 = por %p124_p3, %p62_p0  ;;  %p131_p7 = scmp.lt.s32.totalorder %s628_s14, 3 }
   0xe   : > { %s896_s19 = scalar_select %p696_p4, 1, 0 }
   0xf   : > { %s897_s20 = scalar_select %p701_p6, 1, 0 }
  0x10   : > { %p706_p8 = pnand %p390_p5, %p131_p7  ;;  %s630_s22 = smov [#allocation5]  }
  0x11   : > { %s149_s23 = sshll.u32 %s630_s22, 4  ;;  %s31_s25 = sadd.s32 1, %s624_s13  ;;  %s150_s23 = int_to_ptr.vmem [resolvable:$true] %s149_s23 }
  0x12   : > { %s898_s21 = scalar_select %p706_p8, 1, 0 }
  0x13   : > { %p415_p9 = pneg %p706_p8  ;;  %s484_s28 = scalar_lea.hbm %s888_s1, 1024 }
  0x14   : > { %p485_p12 = scmp.ne.s32.totalorder %s888_s1, %s484_s28  ;;  %p491_p5 = scmp.lt.u32.totalorder %s484_s28, %s888_s1 }
  0x15   : > { %p715_p11 = pnand %p415_p9, %p686_p1 }
  0x17   : > { %p486_p13 = pneg %p715_p11 }
  0x19   : > { %p487_p0 = pnand %p486_p13, %p485_p12 }
  0x1b   : > { %p488_p3 = pneg %p487_p0 }
  0x1d   : > { %p493_p7 = pnand %p491_p5, %p488_p3 }
  0x1f   : > { %496 = shalt.err (!%p493_p7)
}
  0x20   : > { %s497_s5 = scalar_lea.vmem %s150_s23, 1024  ;;  %p505_p1 = scmp.lt.s32.totalorder %s150_s23, %s150_s23 }
  0x21   : > { %p498_p9 = scmp.ne.s32.totalorder %s150_s23, %s497_s5  ;;  %p506_p4 = scmp.lt.s32.totalorder %s497_s5, %s497_s5 }
  0x23   : > { %p500_p10 = pnand %p498_p9, %p486_p13  ;;  %p507_p8 = por %p506_p4, %p505_p1 }
  0x25   : > { %p501_p6 = pneg %p500_p10 }
  0x27   : > { %p508_p2 = pnand %p507_p8, %p501_p6 }
  0x29   : > { %511 = shalt.err (!%p508_p2)
}
  0x2a   : > { %s631_s6 = smov 512   ;;  %s632_s7 = smov 32  }
  0x2b   : > { %418 = dma.hbm_to_vmem [thread:$0]  (!%p715_p11), %s888_s1, 1024, %s150_s23, [#allocation6], %s631_s6, %s631_s6, %s632_s7  }
  0x2c   : > { %p32_p1 = scmp.ge.s32.totalorder %s31_s25, 2  ;;  %s49_s16 = sadd.s32 1, %s616_s11 }
  0x2d   : > { %p56_p2 = scmp.ne.s32.totalorder %s616_s11, %s612_s10  ;;  %p57_p4 = scmp.eq.s32.totalorder %s628_s14, 0 }
  0x2e   : > { %s915_s25 = smov (%p32_p1, %s31_s25), 0  ;;  %p901_p8 = scmp.ne.s32.totalorder %s895_s18, 0 }
  0x2f   : > { %p745_p6 = por %p57_p4, %p56_p2  ;;  %s42_s26 = ssub.s32 %s624_s13, %s915_s25 }
  0x30   : > { %p751_p10 = por %p901_p8, %p56_p2  ;;  %p428_p12 = scmp.lt.s32.totalorder %s628_s14, 2 }
  0x31   : > { %p47_p11 = scmp.eq.s32.totalorder %s42_s26, 0  ;;  %s163_s23 = sand.u32 1, %s616_s11  }
  0x32   : > { %s393_s27 = sshll.u32 %s163_s23, 6  ;;  %s405_s29 = sshll.u32 %s624_s13, 10 }
  0x33   : > { %s760_s28 = scalar_select %p47_p11, %s616_s11, %s49_s16  }
  0x34   : > { %s766_s4 = scalar_lea.hbm %s887_s0, %s405_s29  ;;  %s167_s18 = scalar_lea.vmem [#allocation2], %s393_s27 }
  0x35   : > { %s179_s5 = sshll.u32 %s167_s18, 4  ;;  %p772_p13 = pnand %p428_p12, %p745_p6  ;;  %s768_s5 = int_to_ptr.vmem [resolvable:$true] %s179_s5 }
  0x36   : > { %s776_s15 = scalar_lea.sflag [#allocation3], %s163_s23  ;;  %s512_s16 = scalar_lea.hbm %s766_s4, 1024 }
  0x37   : > { %p513_p0 = scmp.ne.s32.totalorder %s766_s4, %s512_s16  ;;  %p514_p3 = pneg %p772_p13 }
  0x38   : > { %s517_s22 = scalar_lea.hbm %s887_s0, 2048  ;;  %p518_p9 = scmp.lt.u32.totalorder %s766_s4, %s887_s0 }
  0x39   : > { %p515_p5 = pnand %p514_p3, %p513_p0  ;;  %p519_p1 = scmp.lt.u32.totalorder %s517_s22, %s512_s16 }
  0x3a   : > { %p521_p4 = scmp.lt.u32.totalorder %s512_s16, %s766_s4 }
  0x3b   : > { %p516_p7 = pneg %p515_p5  ;;  %p520_p2 = por %p519_p1, %p518_p9 }
  0x3d   : > { %p522_p6 = por %p521_p4, %p520_p2 }
  0x3f   : > { %p523_p8 = pnand %p522_p6, %p516_p7 }
  0x41   : > { %526 = shalt.err (!%p523_p8)
}
  0x42   : > { %s527_s23 = scalar_lea.vmem %s768_s5, 1024  ;;  %s633_s3 = smov [#allocation2]  }
  0x43   : > { %p528_p12 = scmp.ne.s32.totalorder %s768_s5, %s527_s23  ;;  %s532_s18 = sshll.u32 %s633_s3, 4  ;;  %s533_s18 = int_to_ptr.vmem [resolvable:$false] %s532_s18 }
  0x44   : > { %s534_s26 = scalar_lea.vmem %s533_s18, 2048  ;;  %p535_p5 = scmp.lt.s32.totalorder %s768_s5, %s533_s18 }
  0x45   : > { %p530_p11 = pnand %p528_p12, %p514_p3  ;;  %p536_p9 = scmp.lt.s32.totalorder %s534_s26, %s527_s23 }
  0x47   : > { %p531_p0 = pneg %p530_p11  ;;  %p537_p1 = por %p536_p9, %p535_p5 }
  0x49   : > { %p538_p2 = pnand %p537_p1, %p531_p0 }
  0x4b   : > { %541 = shalt.err (!%p538_p2)
}
  0x4c   : > { %422 = dma.hbm_to_vmem [thread:$0]  (!%p772_p13), %s766_s4, 1024, %s768_s5, %s776_s15, %s631_s6, %s631_s6, %s632_s7  }
  0x4d   : > { %p904_p3 = scmp.ne.s32.totalorder %s898_s21, 0 }
  0x4e   : > { %s810_s16 = sand.u32 (!%p904_p3), 1, %s612_s10   ;;  %p905_p7 = scmp.ne.s32.totalorder (!%p904_p3), %s896_s19, 0 }
  0x4f   : > { %191 = sbr.rel (%p904_p3) target bundleno = 116 (0x74), region = 28  ;;  %s397_s27 = sshll.u32 (!%p904_p3), %s810_s16, 6 }
  0x50   : > { %s194_s22 = scalar_lea.sflag (!%p904_p3), [#allocation3], %s810_s16  ;;  %s814_s29 = scalar_lea.vmem (!%p904_p3), [#allocation2], %s397_s27 }
  0x56   : > { %595 = dma.done.wait (%p905_p7), %s194_s22, 1024  }
  0x57   : > { %597 = vsyncadd (%p905_p7), %s194_s22, 4294966272  ;;  %p906_p13 = scmp.ne.s32.totalorder %s894_s17, 0 }
  0x59   : > { %599 = dma.done.wait (%p906_p13), [#allocation6], 1024  }
  0x5a   : > { %601 = vsyncadd (%p906_p13), [#allocation6], 4294966272  ;;  %v228_v0 = vld [vmem:[%s814_s29] sm:$0xff]  ;;  %v229_v2 = vld [vmem:[%s814_s29 + $0x8] sm:$0xff]  ;;  %s221_s19 = scalar_lea.vmem [#allocation7], %s397_s27  ;;  %s406_s17 = sshll.u32 %s620_s12, 10 }
  0x5b   : > { %v236_v1 = vld [vmem:[#allocation5] sm:$0xff]  ;;  %v237_v4 = vld [vmem:[#allocation5 + $0x8] sm:$0xff]  ;;  %v230_v5 = vld [vmem:[%s814_s29 + $0x10] sm:$0xff]  ;;  %s279_s21 = sshll.u32 %s221_s19, 4  ;;  %s838_s7 = scalar_lea.hbm %s889_s2, %s406_s17  ;;  %s833_s21 = int_to_ptr.vmem [resolvable:$true] %s279_s21 }
  0x5c   : > { %v244_v3 = vadd.f32 %v236_v1, %v228_v0  ;;  %v238_v6 = vld [vmem:[#allocation5 + $0x10] sm:$0xff]  ;;  %v245_v7 = vadd.f32 %v237_v4, %v229_v2  ;;  %v231_v9 = vld [vmem:[%s814_s29 + $0x18] sm:$0xff]  ;;  %v232_v11 = vld [vmem:[%s814_s29 + $0x20] sm:$0xff]  ;;  %s261_s4 = scalar_lea.sflag [#allocation4], %s810_s16  ;;  %s542_s5 = scalar_lea.vmem %s833_s21, 1024 }
  0x5d   : > { %v246_v8 = vadd.f32 %v238_v6, %v230_v5  ;;  %v239_v10 = vld [vmem:[#allocation5 + $0x18] sm:$0xff]  ;;  %v240_v13 = vld [vmem:[#allocation5 + $0x20] sm:$0xff]  ;;  %v233_v14 = vld [vmem:[%s814_s29 + $0x28] sm:$0xff]  ;;  %p543_p4 = scmp.ne.s32.totalorder %s833_s21, %s542_s5  ;;  %s634_s8 = smov [#allocation7]  }
  0x5e   : > { %252 = vst [vmem:[%s221_s19] sm:$0xff] %v244_v3  ;;  %v247_v12 = vadd.f32 %v239_v10, %v231_v9  ;;  %v241_v15 = vld [vmem:[#allocation5 + $0x28] sm:$0xff]  ;;  %253 = vst [vmem:[%s221_s19 + $0x8] sm:$0xff] %v245_v7  ;;  %v248_v16 = vadd.f32 %v240_v13, %v232_v11  ;;  %v234_v18 = vld [vmem:[%s814_s29 + $0x30] sm:$0xff]  ;;  %s546_s15 = sshll.u32 %s634_s8, 4  ;;  %s547_s15 = int_to_ptr.vmem [resolvable:$false] %s546_s15 }
  0x5f   : > { %254 = vst [vmem:[%s221_s19 + $0x10] sm:$0xff] %v246_v8  ;;  %v249_v17 = vadd.f32 %v241_v15, %v233_v14  ;;  %v242_v19 = vld [vmem:[#allocation5 + $0x30] sm:$0xff]  ;;  %v235_v20 = vld [vmem:[%s814_s29 + $0x38] sm:$0xff]  ;;  %p544_p6 = pnand %p543_p4, %p751_p10  ;;  %s548_s30 = scalar_lea.vmem %s547_s15, 2048 }
  0x60   : > { %255 = vst [vmem:[%s221_s19 + $0x18] sm:$0xff] %v247_v12  ;;  %v250_v21 = vadd.f32 %v242_v19, %v234_v18  ;;  %v243_v22 = vld [vmem:[#allocation5 + $0x38] sm:$0xff]  ;;  %256 = vst [vmem:[%s221_s19 + $0x20] sm:$0xff] %v248_v16  ;;  %p549_p12 = scmp.lt.s32.totalorder %s833_s21, %s547_s15  ;;  %p550_p11 = scmp.lt.s32.totalorder %s548_s30, %s542_s5 }
  0x61   : > { %257 = vst [vmem:[%s221_s19 + $0x28] sm:$0xff] %v249_v17  ;;  %v251_v23 = vadd.f32 %v243_v22, %v235_v20  ;;  %p545_p8 = pneg %p544_p6 }
  0x62   : > { %258 = vst [vmem:[%s221_s19 + $0x30] sm:$0xff] %v250_v21  ;;  %p551_p0 = por %p550_p11, %p549_p12 }
  0x63   : > { %259 = vst [vmem:[%s221_s19 + $0x38] sm:$0xff] %v251_v23 }
  0x64   : > { %p552_p5 = pnand %p551_p0, %p545_p8 }
  0x66   : > { %555 = shalt.err (!%p552_p5)
}
  0x67   : > { %s556_s23 = scalar_lea.hbm %s838_s7, 1024  ;;  %s560_s26 = scalar_lea.hbm %s889_s2, 2048 }
  0x68   : > { %p557_p9 = scmp.ne.s32.totalorder %s838_s7, %s556_s23  ;;  %p561_p3 = scmp.lt.u32.totalorder %s838_s7, %s889_s2 }
  0x69   : > { %p562_p7 = scmp.lt.u32.totalorder %s560_s26, %s556_s23  ;;  %p564_p4 = scmp.lt.u32.totalorder %s556_s23, %s838_s7 }
  0x6a   : > { %p558_p1 = pnand %p557_p9, %p751_p10 }
  0x6b   : > { %p563_p13 = por %p562_p7, %p561_p3 }
  0x6c   : > { %p559_p2 = pneg %p558_p1 }
  0x6d   : > { %p565_p6 = por %p564_p4, %p563_p13 }
  0x6f   : > { %p566_p8 = pnand %p565_p6, %p559_p2 }
  0x71   : > { %569 = shalt.err (!%p566_p8)
}
  0x72   : > { %s635_s29 = smov 512   ;;  %s636_s19 = smov 32  }
  0x73   : > { %413 = dma.vmem_to_hbm [thread:$0]  (%p751_p10), %s833_s21, 1024, %s838_s7, %s261_s4, %s635_s29, %s635_s29, %s636_s19  }
  0x74 PF: > { %s294_s17 = sand.u32 1, %s608_s9   ;;  %p907_p12 = scmp.ne.s32.totalorder %s897_s20, 0 }
  0x75   : > { %p908_p11 = scmp.ge.s32.totalorder %s628_s14, 2  ;;  %s295_s12 = scalar_lea.sflag [#allocation4], %s294_s17 }
  0x77   : > { %p424_p0 = pnand %p908_p11, %p907_p12 }
  0x79   : > { %603 = dma.done.wait (!%p424_p0), %s295_s12, 1024  }
  0x7a   : > { %605 = vsyncadd (!%p424_p0), %s295_s12, 4294966272  ;;  %s19_s14 = sadd.s32 1, %s628_s14   ;;  %s909_s9 = smov %s612_s10 }
  0x7b   : > { %p16_p5 = scmp.ge.s32.totalorder %s19_s14, 4   ;;  %s910_s10 = smov %s616_s11 }
  0x7c   : > { %s911_s11 = smov %s760_s28  ;;  %s912_s12 = smov %s624_s13 }
  0x7d   : > { %s913_s13 = smov %s915_s25  ;;  %18 = sbr.rel (!%p16_p5) target bundleno = 7 (0x7), region = 78 }
  0x84   :  { %300 = vsyncpa [#allocation3], 1 }
  0x85   :  { %302 = vsyncpa [#allocation3 + $0x1], 1 }
  0x86   :  { %303 = vsyncpa [#allocation6], 1 }
  0x87   :  { %304 = vsyncpa [#allocation4], 1 }
  0x88   :  { %306 = vsyncpa [#allocation4 + $0x1], 1 }

</bundles_post_ra>
